<compile_context>
chip_gen: v7x
topology: tpu7x:2x2x1
jax: 0.10.0
libtpu: 0.0.40
codegen_flags: <defaults>
</compile_context>

<pallas_src>
import jax
import jax.numpy as jnp
from jax import lax
from jax.experimental import pallas as pl
from jax.experimental.pallas import tpu as pltpu


LEAKY_SLOPE = 0.01  # PyTorch nn.LeakyReLU default negative_slope
LANE = 128
SUBLANE = 8


def _round_up(n, m):
    return ((n + m - 1) // m) * m


def _leaky_relu(v):
    return jnp.where(v >= 0, v, LEAKY_SLOPE * v)


def classifier_kernel(x_ref,
                      w1_ref, b1_ref,
                      w2_ref, b2_ref,
                      w3_ref, b3_ref,
                      w4_ref, b4_ref,
                      o_ref):
    """One batch tile: Linear->LeakyReLU x3 -> Linear -> Sigmoid.

    Matmuls run in the weight dtype (bf16 by default, f32 optional) with f32 MXU
    accumulation; the elementwise epilogue (bias add, LeakyReLU, sigmoid) is f32.
    The final layer is computed transposed so the logits come out lane-dense.
    """
    cdt = w1_ref.dtype
    x = x_ref[...].astype(cdt)                                   # (tile_b, dim)

    h = jnp.dot(x, w1_ref[...], preferred_element_type=jnp.float32) + b1_ref[...]
    h = _leaky_relu(h)

    h = jnp.dot(h.astype(cdt), w2_ref[...],
                preferred_element_type=jnp.float32) + b2_ref[...]
    h = _leaky_relu(h)

    h = jnp.dot(h.astype(cdt), w3_ref[...],
                preferred_element_type=jnp.float32) + b3_ref[...]
    h = _leaky_relu(h)

    # Final Linear(H, 1), transposed: contract the hidden (lane) dim of both operands so
    # the batch index lands on the lane dim of the result. w4_ref is (8, h_p) with the
    # real weight row in sublane 0 (rows 1..7 are zero padding for clean MXU tiling).
    y8 = lax.dot_general(w4_ref[...], h.astype(cdt),
                         dimension_numbers=(((1,), (1,)), ((), ())),
                         preferred_element_type=jnp.float32)     # (8, tile_b)
    y = y8[0:1, :] + b4_ref[...]                                 # (1, tile_b), real logits only
    o_ref[...] = jax.nn.sigmoid(y)


def prepare_params(params, compute_dtype=jnp.bfloat16):
    """One-time padding + dtype cast of the weights (hoisted out of the forward path).

    Zero padding is inert: padded weight rows/cols contribute 0, padded biases are 0,
    LeakyReLU(0) = 0, so padded hidden lanes stay exactly zero through the network.
    """
    dim, H = params["w1"].shape
    h_p = _round_up(H, LANE)

    def pad2(a, rows, cols, dtype):
        return jnp.zeros((rows, cols), dtype).at[:a.shape[0], :a.shape[1]].set(
            a.astype(dtype))

    return {
        # dim stays unpadded: only the output (hidden) dim of w1 is padded to 128 lanes.
        "w1": pad2(params["w1"], dim, h_p, compute_dtype),
        "w2": pad2(params["w2"], h_p, h_p, compute_dtype),
        "w3": pad2(params["w3"], h_p, h_p, compute_dtype),
        # Final weight stored as a row (1, H) padded into an (8, h_p) slab, row 0 real.
        "w4": pad2(params["w4"].T, 8, h_p, compute_dtype),
        # Biases stay f32: the epilogue math is always f32.
        "b1": pad2(params["b1"], 1, h_p, jnp.float32),
        "b2": pad2(params["b2"], 1, h_p, jnp.float32),
        "b3": pad2(params["b3"], 1, h_p, jnp.float32),
        "b4": params["b4"].reshape(1, 1).astype(jnp.float32),
    }


def classifier_forward(x, prepared, *, tile_b_cap=2048):
    """x: [B, dim] float32. prepared: output of prepare_params. Returns [B, 1] float32."""
    B, dim = x.shape
    assert prepared["w1"].shape[0] == dim, (prepared["w1"].shape, dim)
    h_p = prepared["w1"].shape[1]

    # Adaptive batch tile: multiple of 128 (lane-dense packed output), capped, and never
    # larger than needed for small B (avoids over-padding the batch).
    cap = max(LANE, _round_up(int(tile_b_cap), LANE))
    tile_b = min(cap, _round_up(B, LANE))
    b_pad = _round_up(B, tile_b)

    # Batch padding only when needed (no feature-dim padding, no dtype cast of x here;
    # activations are cast to the compute dtype inside the kernel).
    xp = x if b_pad == B else jnp.zeros((b_pad, dim), x.dtype).at[:B].set(x)

    grid = (b_pad // tile_b,)

    def resident(shape):
        # Same block index every grid step -> stays VMEM-resident across the whole grid.
        return pl.BlockSpec(shape, lambda i: (0, 0))

    in_specs = [
        pl.BlockSpec((tile_b, dim), lambda i: (i, 0)),   # full-extent last dim (=dim) is exempt
        resident(prepared["w1"].shape), resident(prepared["b1"].shape),
        resident(prepared["w2"].shape), resident(prepared["b2"].shape),
        resident(prepared["w3"].shape), resident(prepared["b3"].shape),
        resident(prepared["w4"].shape), resident(prepared["b4"].shape),
    ]
    # Lane-dense packed logits: one f32 per batch row, contiguous along lanes.
    out_specs = pl.BlockSpec((1, tile_b), lambda i: (0, i))

    wbytes = sum(int(prepared[k].size) * prepared[k].dtype.itemsize
                 for k in ("w1", "b1", "w2", "b2", "w3", "b3", "w4", "b4"))
    cost = pl.CostEstimate(
        flops=2 * b_pad * (dim * h_p + 2 * h_p * h_p + h_p * 8),
        transcendentals=b_pad,  # one sigmoid exp per row
        bytes_accessed=b_pad * dim * x.dtype.itemsize + wbytes + b_pad * 4,
    )

    out = pl.pallas_call(
        classifier_kernel,
        out_shape=jax.ShapeDtypeStruct((1, b_pad), jnp.float32),
        grid=grid,
        in_specs=in_specs,
        out_specs=out_specs,
        compiler_params=pltpu.CompilerParams(
            dimension_semantics=("parallel",),
        ),
        cost_estimate=cost,
    )(xp, prepared["w1"], prepared["b1"], prepared["w2"], prepared["b2"],
      prepared["w3"], prepared["b3"], prepared["w4"], prepared["b4"])

    return out[0, :B].reshape(B, 1)


def init_params(key, dim, hidden_size=30):
    """Deterministic, PyTorch-Linear-style uniform init (U[-1/sqrt(fan_in), 1/sqrt(fan_in)])."""
    ks = jax.random.split(key, 8)

    def linear(kw, kb, fan_in, fan_out):
        bound = 1.0 / jnp.sqrt(fan_in)
        w = jax.random.uniform(kw, (fan_in, fan_out), jnp.float32, -bound, bound)
        b = jax.random.uniform(kb, (1, fan_out), jnp.float32, -bound, bound)
        return w, b

    w1, b1 = linear(ks[0], ks[1], dim, hidden_size)
    w2, b2 = linear(ks[2], ks[3], hidden_size, hidden_size)
    w3, b3 = linear(ks[4], ks[5], hidden_size, hidden_size)
    w4, b4 = linear(ks[6], ks[7], hidden_size, 1)
    return dict(w1=w1, b1=b1, w2=w2, b2=b2, w3=w3, b3=b3, w4=w4, b4=b4)


def reference_forward(x, p):
    """Plain-JAX reference (matches the PyTorch module)."""
    h = _leaky_relu(x @ p["w1"] + p["b1"])
    h = _leaky_relu(h @ p["w2"] + p["b2"])
    h = _leaky_relu(h @ p["w3"] + p["b3"])
    return jax.nn.sigmoid(h @ p["w4"] + p["b4"])


if __name__ == "__main__":
    key = jax.random.PRNGKey(0)
    k_params, k_x = jax.random.split(key)

    batch, dim, hidden = 64, 32, 30
    params = init_params(k_params, dim, hidden)
    x = jax.random.normal(k_x, (batch, dim), jnp.float32)

    ref = reference_forward(x, params)

    # f32 compute path (tight tolerance).
    prep_f32 = prepare_params(params, compute_dtype=jnp.float32)
    out_f32 = jax.block_until_ready(classifier_forward(x, prep_f32))
    assert out_f32.shape == (batch, 1), out_f32.shape
    assert jnp.allclose(out_f32, ref, atol=1e-4, rtol=1e-4), (out_f32, ref)

    # bf16 default compute path (weights + activations bf16, f32 accumulate + epilogue).
    prep_bf16 = prepare_params(params)
    out_bf16 = jax.block_until_ready(classifier_forward(x, prep_bf16))
    assert out_bf16.shape == (batch, 1), out_bf16.shape
    assert jnp.allclose(out_bf16, ref, atol=5e-2), (out_bf16, ref)

    # Multi-tile grid + batch padding + output slicing path.
    x2 = jax.random.normal(jax.random.PRNGKey(2), (300, dim), jnp.float32)
    out2 = jax.block_until_ready(classifier_forward(x2, prep_f32, tile_b_cap=128))
    ref2 = reference_forward(x2, params)
    assert out2.shape == (300, 1), out2.shape
    assert jnp.allclose(out2, ref2, atol=1e-4, rtol=1e-4), (out2, ref2)

    print("KERNEL_OK")
</pallas_src>

<mosaic_0001>
module attributes {stable_mosaic.version = 11 : i64} {
  func.func @classifier_kernel(%arg0: i32, %arg1: memref<128x32xf32, #tpu.memory_space<vmem>>, %arg2: memref<32x128xf32, #tpu.memory_space<vmem>>, %arg3: memref<1x128xf32, #tpu.memory_space<vmem>>, %arg4: memref<128x128xf32, #tpu.memory_space<vmem>>, %arg5: memref<1x128xf32, #tpu.memory_space<vmem>>, %arg6: memref<128x128xf32, #tpu.memory_space<vmem>>, %arg7: memref<1x128xf32, #tpu.memory_space<vmem>>, %arg8: memref<8x128xf32, #tpu.memory_space<vmem>>, %arg9: memref<1x1xf32, #tpu.memory_space<vmem>>, %arg10: memref<1x128xf32, #tpu.memory_space<vmem>>) attributes {dimension_semantics = [#tpu.dimension_semantics<parallel>], iteration_bounds = array<i64: 1>, scalar_prefetch = 0 : i64, scratch_operands = 0 : i64, tpu.core_type = #tpu.core_type<tc>, window_params = [{transform_indices = @transform_0, window_bounds = array<i64: 128, 32>}, {pipeline_mode = #tpu.pipeline_mode<synchronous>, transform_indices = @transform_1, window_bounds = array<i64: 32, 128>}, {pipeline_mode = #tpu.pipeline_mode<synchronous>, transform_indices = @transform_2, window_bounds = array<i64: 1, 128>}, {pipeline_mode = #tpu.pipeline_mode<synchronous>, transform_indices = @transform_3, window_bounds = array<i64: 128, 128>}, {pipeline_mode = #tpu.pipeline_mode<synchronous>, transform_indices = @transform_4, window_bounds = array<i64: 1, 128>}, {pipeline_mode = #tpu.pipeline_mode<synchronous>, transform_indices = @transform_5, window_bounds = array<i64: 128, 128>}, {pipeline_mode = #tpu.pipeline_mode<synchronous>, transform_indices = @transform_6, window_bounds = array<i64: 1, 128>}, {pipeline_mode = #tpu.pipeline_mode<synchronous>, transform_indices = @transform_7, window_bounds = array<i64: 8, 128>}, {pipeline_mode = #tpu.pipeline_mode<synchronous>, transform_indices = @transform_8, window_bounds = array<i64: 1, 1>}, {transform_indices = @transform_9, window_bounds = array<i64: 1, 128>}]} {
    %c0 = arith.constant 0 : index
    %c0_0 = arith.constant 0 : index
    %0 = vector.load %arg1[%c0, %c0_0] : memref<128x32xf32, #tpu.memory_space<vmem>>, vector<128x32xf32>
    %c0_1 = arith.constant 0 : index
    %c0_2 = arith.constant 0 : index
    %1 = vector.load %arg2[%c0_1, %c0_2] : memref<32x128xf32, #tpu.memory_space<vmem>>, vector<32x128xf32>
    %cst = arith.constant dense<0.000000e+00> : vector<128x128xf32>
    %2 = tpu.matmul %0, %1, %cst {dimension_numbers = #tpu.dot_dimension_numbers<[1], [0], [0], [1], [0, 0, 1, 1], [], []>} : vector<128x32xf32>, vector<32x128xf32>, vector<128x128xf32> -> vector<128x128xf32>
    %c0_3 = arith.constant 0 : index
    %c0_4 = arith.constant 0 : index
    %3 = vector.load %arg3[%c0_3, %c0_4] : memref<1x128xf32, #tpu.memory_space<vmem>>, vector<1x128xf32>
    %4 = vector.broadcast %3 : vector<1x128xf32> to vector<128x128xf32>
    %5 = arith.addf %2, %4 : vector<128x128xf32>
    %cst_5 = arith.constant 0.000000e+00 : f32
    %6 = vector.broadcast %cst_5 : f32 to vector<128x128xf32>
    %7 = arith.cmpf oge, %5, %6 : vector<128x128xf32>
    %cst_6 = arith.constant 0.00999999977 : f32
    %8 = vector.broadcast %cst_6 : f32 to vector<128x128xf32>
    %9 = arith.mulf %8, %5 : vector<128x128xf32>
    %10 = arith.select %7, %5, %9 : vector<128x128xi1>, vector<128x128xf32>
    %c0_7 = arith.constant 0 : index
    %c0_8 = arith.constant 0 : index
    %11 = vector.load %arg4[%c0_7, %c0_8] : memref<128x128xf32, #tpu.memory_space<vmem>>, vector<128x128xf32>
    %cst_9 = arith.constant dense<0.000000e+00> : vector<128x128xf32>
    %12 = tpu.matmul %10, %11, %cst_9 {dimension_numbers = #tpu.dot_dimension_numbers<[1], [0], [0], [1], [0, 0, 1, 1], [], []>} : vector<128x128xf32>, vector<128x128xf32>, vector<128x128xf32> -> vector<128x128xf32>
    %c0_10 = arith.constant 0 : index
    %c0_11 = arith.constant 0 : index
    %13 = vector.load %arg5[%c0_10, %c0_11] : memref<1x128xf32, #tpu.memory_space<vmem>>, vector<1x128xf32>
    %14 = vector.broadcast %13 : vector<1x128xf32> to vector<128x128xf32>
    %15 = arith.addf %12, %14 : vector<128x128xf32>
    %cst_12 = arith.constant 0.000000e+00 : f32
    %16 = vector.broadcast %cst_12 : f32 to vector<128x128xf32>
    %17 = arith.cmpf oge, %15, %16 : vector<128x128xf32>
    %cst_13 = arith.constant 0.00999999977 : f32
    %18 = vector.broadcast %cst_13 : f32 to vector<128x128xf32>
    %19 = arith.mulf %18, %15 : vector<128x128xf32>
    %20 = arith.select %17, %15, %19 : vector<128x128xi1>, vector<128x128xf32>
    %c0_14 = arith.constant 0 : index
    %c0_15 = arith.constant 0 : index
    %21 = vector.load %arg6[%c0_14, %c0_15] : memref<128x128xf32, #tpu.memory_space<vmem>>, vector<128x128xf32>
    %cst_16 = arith.constant dense<0.000000e+00> : vector<128x128xf32>
    %22 = tpu.matmul %20, %21, %cst_16 {dimension_numbers = #tpu.dot_dimension_numbers<[1], [0], [0], [1], [0, 0, 1, 1], [], []>} : vector<128x128xf32>, vector<128x128xf32>, vector<128x128xf32> -> vector<128x128xf32>
    %c0_17 = arith.constant 0 : index
    %c0_18 = arith.constant 0 : index
    %23 = vector.load %arg7[%c0_17, %c0_18] : memref<1x128xf32, #tpu.memory_space<vmem>>, vector<1x128xf32>
    %24 = vector.broadcast %23 : vector<1x128xf32> to vector<128x128xf32>
    %25 = arith.addf %22, %24 : vector<128x128xf32>
    %cst_19 = arith.constant 0.000000e+00 : f32
    %26 = vector.broadcast %cst_19 : f32 to vector<128x128xf32>
    %27 = arith.cmpf oge, %25, %26 : vector<128x128xf32>
    %cst_20 = arith.constant 0.00999999977 : f32
    %28 = vector.broadcast %cst_20 : f32 to vector<128x128xf32>
    %29 = arith.mulf %28, %25 : vector<128x128xf32>
    %30 = arith.select %27, %25, %29 : vector<128x128xi1>, vector<128x128xf32>
    %c0_21 = arith.constant 0 : index
    %c0_22 = arith.constant 0 : index
    %31 = vector.load %arg8[%c0_21, %c0_22] : memref<8x128xf32, #tpu.memory_space<vmem>>, vector<8x128xf32>
    %cst_23 = arith.constant dense<0.000000e+00> : vector<8x128xf32>
    %32 = tpu.matmul %31, %30, %cst_23 {dimension_numbers = #tpu.dot_dimension_numbers<[1], [1], [0], [0], [0, 0, 1, 0], [], []>} : vector<8x128xf32>, vector<128x128xf32>, vector<8x128xf32> -> vector<8x128xf32>
    %33 = vector.extract_strided_slice %32 {offsets = [0, 0], sizes = [1, 128], strides = [1, 1]} : vector<8x128xf32> to vector<1x128xf32>
    %c0_24 = arith.constant 0 : index
    %c0_25 = arith.constant 0 : index
    %34 = vector.load %arg9[%c0_24, %c0_25] : memref<1x1xf32, #tpu.memory_space<vmem>>, vector<1x1xf32>
    %35 = vector.broadcast %34 : vector<1x1xf32> to vector<1x128xf32>
    %36 = arith.addf %33, %35 : vector<1x128xf32>
    %37 = arith.negf %36 : vector<1x128xf32>
    %38 = math.exp %37 : vector<1x128xf32>
    %cst_26 = arith.constant 1.000000e+00 : f32
    %39 = vector.broadcast %cst_26 : f32 to vector<1x128xf32>
    %40 = arith.addf %39, %38 : vector<1x128xf32>
    %41 = arith.divf %39, %40 : vector<1x128xf32>
    %c0_27 = arith.constant 0 : index
    %c0_28 = arith.constant 0 : index
    %42 = vector.load %arg10[%c0_27, %c0_28] : memref<1x128xf32, #tpu.memory_space<vmem>>, vector<1x128xf32>
    tpu.vector_store %arg10[%c0_27, %c0_28], %41 {strides = array<i32>} : memref<1x128xf32, #tpu.memory_space<vmem>>, vector<1x128xf32>,
    return
  }
  func.func @transform_0(%arg0: i32) -> (i32, i32) {
    %c0_i32 = arith.constant 0 : i32
    %c0_i32_0 = arith.constant 0 : i32
    return %arg0, %c0_i32 : i32, i32
  }
  func.func @transform_1(%arg0: i32) -> (i32, i32) {
    %c0_i32 = arith.constant 0 : i32
    %c0_i32_0 = arith.constant 0 : i32
    %c0_i32_1 = arith.constant 0 : i32
    return %c0_i32, %c0_i32_0 : i32, i32
  }
  func.func @transform_2(%arg0: i32) -> (i32, i32) {
    %c0_i32 = arith.constant 0 : i32
    %c0_i32_0 = arith.constant 0 : i32
    %c0_i32_1 = arith.constant 0 : i32
    return %c0_i32, %c0_i32_0 : i32, i32
  }
  func.func @transform_3(%arg0: i32) -> (i32, i32) {
    %c0_i32 = arith.constant 0 : i32
    %c0_i32_0 = arith.constant 0 : i32
    %c0_i32_1 = arith.constant 0 : i32
    return %c0_i32, %c0_i32_0 : i32, i32
  }
  func.func @transform_4(%arg0: i32) -> (i32, i32) {
    %c0_i32 = arith.constant 0 : i32
    %c0_i32_0 = arith.constant 0 : i32
    %c0_i32_1 = arith.constant 0 : i32
    return %c0_i32, %c0_i32_0 : i32, i32
  }
  func.func @transform_5(%arg0: i32) -> (i32, i32) {
    %c0_i32 = arith.constant 0 : i32
    %c0_i32_0 = arith.constant 0 : i32
    %c0_i32_1 = arith.constant 0 : i32
    return %c0_i32, %c0_i32_0 : i32, i32
  }
  func.func @transform_6(%arg0: i32) -> (i32, i32) {
    %c0_i32 = arith.constant 0 : i32
    %c0_i32_0 = arith.constant 0 : i32
    %c0_i32_1 = arith.constant 0 : i32
    return %c0_i32, %c0_i32_0 : i32, i32
  }
  func.func @transform_7(%arg0: i32) -> (i32, i32) {
    %c0_i32 = arith.constant 0 : i32
    %c0_i32_0 = arith.constant 0 : i32
    %c0_i32_1 = arith.constant 0 : i32
    return %c0_i32, %c0_i32_0 : i32, i32
  }
  func.func @transform_8(%arg0: i32) -> (i32, i32) {
    %c0_i32 = arith.constant 0 : i32
    %c0_i32_0 = arith.constant 0 : i32
    %c0_i32_1 = arith.constant 0 : i32
    return %c0_i32, %c0_i32_0 : i32, i32
  }
  func.func @transform_9(%arg0: i32) -> (i32, i32) {
    %c0_i32 = arith.constant 0 : i32
    %c0_i32_0 = arith.constant 0 : i32
    return %c0_i32, %arg0 : i32, i32
  }
}

</mosaic_0001>

<bundles_post_ra>
// kernel: tpu_custom_call.1
= control target key start
LH: loop header
LB: loop body
LE: loop exit
PB: predicated region body
PF: predicated region fallthrough
CT: control target
= control target key end

     0   :  { %s1594_s0 = inlined_call_operand.vmem [shape: f32[128,32], index: 0, kind: input, shape index: {}]   ;;  %s1595_s1 = inlined_call_operand.vmem [shape: f32[32,128], index: 1, kind: input, shape index: {}]   ;;  %s1596_s2 = inlined_call_operand.vmem [shape: f32[1,128], index: 2, kind: input, shape index: {}]   ;;  %s1597_s3 = inlined_call_operand.vmem [shape: f32[128,128], index: 3, kind: input, shape index: {}]   ;;  %s1598_s4 = inlined_call_operand.vmem [shape: f32[1,128], index: 4, kind: input, shape index: {}]   ;;  %s1599_s5 = inlined_call_operand.hbm [shape: f32[128,128], index: 5, kind: input, shape index: {}]   ;;  %s1600_s6 = inlined_call_operand.vmem [shape: f32[1,128], index: 6, kind: input, shape index: {}]   ;;  %s1601_s7 = inlined_call_operand.vmem [shape: f32[8,128], index: 7, kind: input, shape index: {}]   ;;  %s1602_s8 = inlined_call_operand.<no memory space> [shape: f32[1,1], index: 8, kind: input, shape index: {}]   ;;  %s1603_s9 = inlined_call_operand.hbm [shape: f32[1,128], index: 9, kind: output, shape index: {}]  }
   0x1   :  { %v14_v0 = vstv %s1602_s8 }
   0x2   :  { %15 = vst [vmem:[#allocation2] sm:$0x1] %v14_v0 }
   0x3   :  { %16 = vsyncpa [#allocation4], 0 }
   0x4   :  { %17 = vsyncpa [#allocation5], 0  ;;  %s1311_s11 = smov [#allocation3]   ;;  %s1263_s15 = scalar_lea.hbm %s1599_s5, 2048 }
   0x5   :  { %s33_s12 = sshll.u32 %s1311_s11, 4  ;;  %p1264_p0 = scmp.ne.s32.totalorder %s1599_s5, %s1263_s15  ;;  %s34_s12 = int_to_ptr.vmem [resolvable:$true] %s33_s12 }
   0x6   :  { %p1267_p1 = scmp.lt.u32.totalorder %s1263_s15, %s1599_s5 }
   0x8   :  { %p1269_p2 = pnand %p1267_p1, %p1264_p0 }
   0xa   :  { %1272 = shalt.err (!%p1269_p2)
}
   0xb   :  { %s1273_s8 = scalar_lea.vmem %s34_s12, 2048  ;;  %p1278_p4 = scmp.lt.s32.totalorder %s34_s12, %s34_s12 }
   0xc   :  { %p1274_p3 = scmp.ne.s32.totalorder %s34_s12, %s1273_s8  ;;  %p1279_p5 = scmp.lt.s32.totalorder %s1273_s8, %s1273_s8 }
   0xe   :  { %p1280_p6 = por %p1279_p5, %p1278_p4 }
  0x10   :  { %p1281_p7 = pnand %p1280_p6, %p1274_p3 }
  0x12   :  { %1284 = shalt.err (!%p1281_p7)
}
  0x13   :  { %s1312_s20 = smov 128   ;;  %s1313_s21 = smov 8  }
  0x14   :  { %39 = dma.hbm_to_vmem [thread:$0]  %s1599_s5, 2048, %s34_s12, [#allocation4], %s1312_s20, %s1312_s20, %s1313_s21  }
  0x15   :  { %1307 = dma.done.wait [#allocation4], 2048  }
  0x16   :  { %1308 = vsyncadd [#allocation4], 4294965248  ;;  %vm76_vm0 = vcmask 261120   ;;  %v65_v1 = vld [vmem:[%s1595_s1] sm:$0xff]  ;;  %v66_v2 = vld [vmem:[%s1595_s1 + $0x8] sm:$0xff]  ;;  %s1318_s27 = smov [#allocation6]  }
  0x17   :  { %v67_v3 = vld [vmem:[%s1595_s1 + $0x10] sm:$0xff]  ;;  %v1154_v4 = vpack.c.bf16 %v66_v2, %v65_v1  ;;  %v68_v5 = vld [vmem:[%s1595_s1 + $0x18] sm:$0xff]  ;;  %v49_v6 = vld [vmem:[%s1594_s0] sm:$0xff]  ;;  %s845_s28 = sshll.u32 %s1318_s27, 4  ;;  %s846_s28 = int_to_ptr.vmem [resolvable:$true] %s845_s28 }
  0x18   :  { %v1158_v7 = vpack.c.bf16 %v68_v5, %v67_v3  ;;  %983 = vmatprep.mubr.msk.f32.mxu0 %vm76_vm0, %v49_v6  ;;  %v318_v8 = vld [vmem:[%s1597_s3] sm:$0xff]  ;;  %v319_v9 = vld [vmem:[%s1597_s3 + $0x8] sm:$0xff]  ;;  %v320_v10 = vld [vmem:[%s1597_s3 + $0x10] sm:$0xff]  ;;  %s1289_s29 = scalar_lea.vmem %s846_s28, 32  ;;  %p1290_p9 = scmp.lt.s32.totalorder %s846_s28, %s846_s28 }
  0x19   :  { %1155 = vmatprep.subr.bf16.mxu0 %v1154_v4  ;;  %v321_v11 = vld [vmem:[%s1597_s3 + $0x18] sm:$0xff]  ;;  %v50_v12 = vld [vmem:[%s1594_s0 + $0x8] sm:$0xff]  ;;  %v1162_v13 = vpack.c.bf16 %v319_v9, %v318_v8  ;;  %v51_v15 = vld [vmem:[%s1594_s0 + $0x10] sm:$0xff] }
  0x1a   :  { %1157 = vmatpush3.bf16.msra.mxu0 %v1154_v4  ;;  %v1166_v14 = vpack.c.bf16 %v321_v11, %v320_v10  ;;  %v322_v16 = vld [vmem:[%s1597_s3 + $0x20] sm:$0xff]  ;;  %v323_v17 = vld [vmem:[%s1597_s3 + $0x28] sm:$0xff]  ;;  %v52_v18 = vld [vmem:[%s1594_s0 + $0x18] sm:$0xff] }
  0x1b   :  { %1159 = vmatprep.subr.bf16.mxu0 %v1158_v7  ;;  %1163 = vmatprep.subr.bf16.mxu1 %v1162_v13  ;;  %v1170_v19 = vpack.c.bf16 %v323_v17, %v322_v16  ;;  %v53_v20 = vld [vmem:[%s1594_s0 + $0x20] sm:$0xff]  ;;  %v324_v21 = vld [vmem:[%s1597_s3 + $0x30] sm:$0xff]  ;;  %v325_v22 = vld [vmem:[%s1597_s3 + $0x38] sm:$0xff] }
  0x1c   :  { %1165 = vmatpush3.bf16.msra.mxu1 %v1162_v13  ;;  %v54_v23 = vld [vmem:[%s1594_s0 + $0x28] sm:$0xff]  ;;  %v1174_v24 = vpack.c.bf16 %v325_v22, %v324_v21  ;;  %v55_v25 = vld [vmem:[%s1594_s0 + $0x30] sm:$0xff]  ;;  %v326_v26 = vld [vmem:[%s1597_s3 + $0x40] sm:$0xff] }
  0x1d   :  { %1167 = vmatprep.subr.bf16.mxu1 %v1166_v14  ;;  %v327_v27 = vld [vmem:[%s1597_s3 + $0x48] sm:$0xff]  ;;  %v56_v28 = vld [vmem:[%s1594_s0 + $0x38] sm:$0xff]  ;;  %v57_v30 = vld [vmem:[%s1594_s0 + $0x40] sm:$0xff] }
  0x1e   :  { %1161 = vmatpush3.bf16.msra.mxu0 %v1158_v7  ;;  %v1178_v29 = vpack.c.bf16 %v327_v27, %v326_v26  ;;  %v328_v31 = vld [vmem:[%s1597_s3 + $0x50] sm:$0xff]  ;;  %v329_v32 = vld [vmem:[%s1597_s3 + $0x58] sm:$0xff]  ;;  %v58_v33 = vld [vmem:[%s1594_s0 + $0x48] sm:$0xff] }
  0x1f   :  { %v1182_v34 = vpack.c.bf16 %v329_v32, %v328_v31  ;;  %v59_v35 = vld [vmem:[%s1594_s0 + $0x50] sm:$0xff]  ;;  %v60_v36 = vld [vmem:[%s1594_s0 + $0x58] sm:$0xff]  ;;  %v61_v37 = vld [vmem:[%s1594_s0 + $0x60] sm:$0xff] }
  0x20   :  { %1169 = vmatpush3.bf16.msra.mxu1 %v1166_v14  ;;  %v62_v38 = vld [vmem:[%s1594_s0 + $0x68] sm:$0xff]  ;;  %v63_v39 = vld [vmem:[%s1594_s0 + $0x70] sm:$0xff]  ;;  %v64_v40 = vld [vmem:[%s1594_s0 + $0x78] sm:$0xff] }
  0x21   :  { %984 = vmatmul.mubr.msk.f32.vlgmr.msra.gmra.mrb[0].mxu0 %vm76_vm0, %v50_v12  ;;  %1171 = vmatprep.subr.bf16.mxu1 %v1170_v19  ;;  %v330_v41 = vld [vmem:[%s1597_s3 + $0x60] sm:$0xff]  ;;  %v331_v42 = vld [vmem:[%s1597_s3 + $0x68] sm:$0xff]  ;;  %v332_v44 = vld [vmem:[%s1597_s3 + $0x70] sm:$0xff] }
  0x22   :  { %986 = vmatprep.mubr.msk.f32.mxu0 %vm76_vm0, %v51_v15  ;;  %v1186_v43 = vpack.c.bf16 %v331_v42, %v330_v41  ;;  %v333_v45 = vld [vmem:[%s1597_s3 + $0x78] sm:$0xff]  ;;  %v534_v47 = vld [vmem:[#allocation3] sm:$0xff]  ;;  %v535_v48 = vld [vmem:[#allocation3 + $0x8] sm:$0xff] }
  0x23   :  { %v1190_v46 = vpack.c.bf16 %v333_v45, %v332_v44  ;;  %v536_v49 = vld [vmem:[#allocation3 + $0x10] sm:$0xff]  ;;  %v1194_v50 = vpack.c.bf16 %v535_v48, %v534_v47  ;;  %v537_v51 = vld [vmem:[#allocation3 + $0x18] sm:$0xff]  ;;  %v538_v53 = vld [vmem:[#allocation3 + $0x20] sm:$0xff] }
  0x24   :  { %1173 = vmatpush3.bf16.msra.mxu1 %v1170_v19  ;;  %v1198_v52 = vpack.c.bf16 %v537_v51, %v536_v49  ;;  %v539_v54 = vld [vmem:[#allocation3 + $0x28] sm:$0xff]  ;;  %v540_v56 = vld [vmem:[#allocation3 + $0x30] sm:$0xff]  ;;  %v541_v57 = vld [vmem:[#allocation3 + $0x38] sm:$0xff] }
  0x25   :  { %987 = vmatmul.mubr.msk.f32.gmra.mrb[2].mxu0 %vm76_vm0, %v52_v18  ;;  %1175 = vmatprep.subr.bf16.mxu1 %v1174_v24  ;;  %v1202_v55 = vpack.c.bf16 %v539_v54, %v538_v53  ;;  %v1206_v58 = vpack.c.bf16 %v541_v57, %v540_v56  ;;  %v542_v59 = vld [vmem:[#allocation3 + $0x40] sm:$0xff]  ;;  %v543_v60 = vld [vmem:[#allocation3 + $0x48] sm:$0xff]  ;;  %v544_v62 = vld [vmem:[#allocation3 + $0x50] sm:$0xff] }
  0x26   :  { %989 = vmatprep.mubr.msk.f32.mxu0 %vm76_vm0, %v53_v20  ;;  %1195 = vmatprep.subr.bf16.mxu0 %v1194_v50  ;;  %v1210_v61 = vpack.c.bf16 %v543_v60, %v542_v59  ;;  %v545_v63 = vld [vmem:[#allocation3 + $0x58] sm:$0xff]  ;;  %v546_v1 = vld [vmem:[#allocation3 + $0x60] sm:$0xff]  ;;  %v547_v2 = vld [vmem:[#allocation3 + $0x68] sm:$0xff] }
  0x27   :  { %1197 = vmatpush3.bf16.msra.mxu0 %v1194_v50  ;;  %v1214_v0 = vpack.c.bf16 %v545_v63, %v544_v62  ;;  %v1218_v3 = vpack.c.bf16 %v547_v2, %v546_v1  ;;  %v1511_v4 = vld [vmem:[%s1596_s2] ss:$0 sm:$0xff] }
  0x28   :  { %1177 = vmatpush3.bf16.msra.mxu1 %v1174_v24  ;;  %1199 = vmatprep.subr.bf16.mxu0 %v1198_v52 }
  0x29   :  { %990 = vmatmul.mubr.msk.f32.gmra.mrb[4].mxu0 %vm76_vm0, %v54_v23  ;;  %1179 = vmatprep.subr.bf16.mxu1 %v1178_v29 }
  0x2a   :  { %992 = vmatprep.mubr.msk.f32.mxu0 %vm76_vm0, %v55_v25 }
  0x2b   :  { %1201 = vmatpush3.bf16.msra.mxu0 %v1198_v52 }
  0x2c   :  { %1181 = vmatpush3.bf16.msra.mxu1 %v1178_v29  ;;  %1203 = vmatprep.subr.bf16.mxu0 %v1202_v55 }
  0x2d   :  { %993 = vmatmul.mubr.msk.f32.gmra.mrb[6].mxu0 %vm76_vm0, %v56_v28  ;;  %1183 = vmatprep.subr.bf16.mxu1 %v1182_v34 }
  0x2e   :  { %995 = vmatprep.mubr.msk.f32.mxu0 %vm76_vm0, %v57_v30 }
  0x2f   :  { %1205 = vmatpush3.bf16.msra.mxu0 %v1202_v55 }
  0x30   :  { %1185 = vmatpush3.bf16.msra.mxu1 %v1182_v34  ;;  %1207 = vmatprep.subr.bf16.mxu0 %v1206_v58 }
  0x31   :  { %996 = vmatmul.mubr.msk.f32.gmra.mrb[8].mxu0 %vm76_vm0, %v58_v33  ;;  %1187 = vmatprep.subr.bf16.mxu1 %v1186_v43 }
  0x32   :  { %998 = vmatprep.mubr.msk.f32.mxu0 %vm76_vm0, %v59_v35 }
  0x33   :  { %1209 = vmatpush3.bf16.msra.mxu0 %v1206_v58 }
  0x34   :  { %1189 = vmatpush3.bf16.msra.mxu1 %v1186_v43  ;;  %1211 = vmatprep.subr.bf16.mxu0 %v1210_v61 }
  0x35   :  { %999 = vmatmul.mubr.msk.f32.gmra.mrb[10].mxu0 %vm76_vm0, %v60_v36  ;;  %1191 = vmatprep.subr.bf16.mxu1 %v1190_v46 }
  0x36   :  { %1001 = vmatprep.mubr.msk.f32.mxu0 %vm76_vm0, %v61_v37 }
  0x37   :  { %1213 = vmatpush3.bf16.msra.mxu0 %v1210_v61 }
  0x38   :  { %1193 = vmatpush3.bf16.msra.mxu1 %v1190_v46  ;;  %1215 = vmatprep.subr.bf16.mxu0 %v1214_v0 }
  0x39   :  { %1002 = vmatmul.mubr.msk.f32.gmra.mrb[12].mxu0 %vm76_vm0, %v62_v38 }
  0x3a   :  { %1004 = vmatprep.mubr.msk.f32.mxu0 %vm76_vm0, %v63_v39 }
  0x3b   :  { %1217 = vmatpush3.bf16.msra.mxu0 %v1214_v0 }
  0x3c   :  { %1219 = vmatprep.subr.bf16.mxu0 %v1218_v3 }
  0x3d   :  { %1005 = vmatmul.mubr.msk.f32.gmra.mrb[14].mxu0 %vm76_vm0, %v64_v40 }
  0x3f   :  { %1221 = vmatpush3.bf16.msra.mxu0 %v1218_v3 }
  0xf4   :  { %v985_v5 = vpop.f32.mrb[0].mxu0 }
  0xf5   :  { %v197_v6 = vadd.f32 %v985_v5, %v1511_v4  ;;  %v191_v7 = vpop.f32.mrb[1].mxu0 }
  0xf6   :  { %v192_v8 = vadd.f32 %v1511_v4, %v191_v7  ;;  %v549_v7 = vld [vmem:[#allocation3 + $0x78] sm:$0xff] }
  0xf7   :  { %v287_v9 = vmul.f32 0.01, %v197_v6  ;;  %vm271_vm2 = vcmp.ge.f32.partialorder %v197_v6, 0.0 }
  0xf8   :  { %v988_v10 = vpop.f32.mrb[2].mxu0  ;;  %vm270_vm1 = vcmp.ge.f32.partialorder %v192_v8, 0.0  ;;  %v286_v11 = vmul.f32 0.01, %v192_v8 }
  0xf9   :  { %v207_v12 = vadd.f32 %v988_v10, %v1511_v4  ;;  %v201_v13 = vpop.f32.mrb[3].mxu0  ;;  %v303_v17 = vsel %vm271_vm2, %v197_v6, %v287_v9  ;;  %v548_v6 = vld [vmem:[#allocation3 + $0x70] sm:$0xff]  ;;  %v1532_v9 = vld [vmem:[%s1598_s4] ss:$0 sm:$0xff] }
  0xfa   :  { %v202_v14 = vadd.f32 %v1511_v4, %v201_v13  ;;  %v302_v15 = vsel %vm270_vm1, %v192_v8, %v286_v11  ;;  %v1222_v8 = vpack.c.bf16 %v549_v7, %v548_v6 }
  0xfb   :  { %v289_v16 = vmul.f32 0.01, %v207_v12  ;;  %1039 = vmatprep.mubr.f32.mxu1 %v302_v15  ;;  %vm273_vm3 = vcmp.ge.f32.partialorder %v207_v12, 0.0 }
  0xfc   :  { %v288_v18 = vmul.f32 0.01, %v202_v14  ;;  %v991_v19 = vpop.f32.mrb[4].mxu0  ;;  %1040 = vmatmul.mubr.f32.vlgmr.msra.gmra.mrb[0].mxu1 %v303_v17  ;;  %vm272_vm4 = vcmp.ge.f32.partialorder %v202_v14, 0.0  ;;  %1223 = vmatprep.subr.bf16.mxu0 %v1222_v8 }
  0xfd   :  { %v217_v20 = vadd.f32 %v991_v19, %v1511_v4  ;;  %v211_v21 = vpop.f32.mrb[5].mxu0  ;;  %v305_v22 = vsel %vm273_vm3, %v207_v12, %v289_v16  ;;  %1225 = vmatpush3.bf16.msra.mxu0 %v1222_v8 }
  0xfe   :  { %v212_v23 = vadd.f32 %v1511_v4, %v211_v21  ;;  %v304_v24 = vsel %vm272_vm4, %v202_v14, %v288_v18 }
  0xff   :  { %v291_v25 = vmul.f32 0.01, %v217_v20  ;;  %1042 = vmatprep.mubr.f32.mxu1 %v304_v24  ;;  %vm275_vm5 = vcmp.ge.f32.partialorder %v217_v20, 0.0 }
 0x100   :  { %v290_v26 = vmul.f32 0.01, %v212_v23  ;;  %1043 = vmatmul.mubr.f32.gmra.mrb[2].mxu1 %v305_v22  ;;  %v994_v27 = vpop.f32.mrb[6].mxu0  ;;  %vm274_vm6 = vcmp.ge.f32.partialorder %v212_v23, 0.0 }
 0x101   :  { %v227_v28 = vadd.f32 %v994_v27, %v1511_v4  ;;  %v221_v29 = vpop.f32.mrb[7].mxu0  ;;  %v307_v30 = vsel %vm275_vm5, %v217_v20, %v291_v25 }
 0x102   :  { %v222_v31 = vadd.f32 %v1511_v4, %v221_v29  ;;  %v306_v32 = vsel %vm274_vm6, %v212_v23, %v290_v26 }
 0x103   :  { %v293_v33 = vmul.f32 0.01, %v227_v28  ;;  %1045 = vmatprep.mubr.f32.mxu1 %v306_v32  ;;  %vm277_vm7 = vcmp.ge.f32.partialorder %v227_v28, 0.0 }
 0x104   :  { %v292_v34 = vmul.f32 0.01, %v222_v31  ;;  %1046 = vmatmul.mubr.f32.gmra.mrb[4].mxu1 %v307_v30  ;;  %vm276_vm8 = vcmp.ge.f32.partialorder %v222_v31, 0.0  ;;  %v997_v35 = vpop.f32.mrb[8].mxu0 }
 0x105   :  { %v237_v36 = vadd.f32 %v997_v35, %v1511_v4  ;;  %v309_v37 = vsel %vm277_vm7, %v227_v28, %v293_v33  ;;  %v231_v38 = vpop.f32.mrb[9].mxu0 }
 0x106   :  { %v308_v39 = vsel %vm276_vm8, %v222_v31, %v292_v34  ;;  %v232_v40 = vadd.f32 %v1511_v4, %v231_v38 }
 0x107   :  { %1048 = vmatprep.mubr.f32.mxu1 %v308_v39  ;;  %v295_v41 = vmul.f32 0.01, %v237_v36  ;;  %vm279_vm9 = vcmp.ge.f32.partialorder %v237_v36, 0.0 }
 0x108   :  { %1049 = vmatmul.mubr.f32.gmra.mrb[6].mxu1 %v309_v37  ;;  %v294_v42 = vmul.f32 0.01, %v232_v40  ;;  %vm278_vm10 = vcmp.ge.f32.partialorder %v232_v40, 0.0  ;;  %v1000_v43 = vpop.f32.mrb[10].mxu0 }
 0x109   :  { %v247_v44 = vadd.f32 %v1000_v43, %v1511_v4  ;;  %v311_v45 = vsel %vm279_vm9, %v237_v36, %v295_v41  ;;  %v241_v46 = vpop.f32.mrb[11].mxu0 }
 0x10a   :  { %v310_v47 = vsel %vm278_vm10, %v232_v40, %v294_v42  ;;  %v242_v48 = vadd.f32 %v1511_v4, %v241_v46 }
 0x10b   :  { %1051 = vmatprep.mubr.f32.mxu1 %v310_v47  ;;  %v297_v49 = vmul.f32 0.01, %v247_v44  ;;  %vm281_vm11 = vcmp.ge.f32.partialorder %v247_v44, 0.0 }
 0x10c   :  { %1052 = vmatmul.mubr.f32.gmra.mrb[8].mxu1 %v311_v45  ;;  %v296_v50 = vmul.f32 0.01, %v242_v48  ;;  %vm280_vm12 = vcmp.ge.f32.partialorder %v242_v48, 0.0  ;;  %v1003_v51 = vpop.f32.mrb[12].mxu0 }
 0x10d   :  { %v257_v52 = vadd.f32 %v1003_v51, %v1511_v4  ;;  %v313_v53 = vsel %vm281_vm11, %v247_v44, %v297_v49  ;;  %v251_v54 = vpop.f32.mrb[13].mxu0 }
 0x10e   :  { %v312_v55 = vsel %vm280_vm12, %v242_v48, %v296_v50  ;;  %v252_v56 = vadd.f32 %v1511_v4, %v251_v54 }
 0x10f   :  { %1054 = vmatprep.mubr.f32.mxu1 %v312_v55  ;;  %v299_v57 = vmul.f32 0.01, %v257_v52  ;;  %vm283_vm13 = vcmp.ge.f32.partialorder %v257_v52, 0.0 }
 0x110   :  { %1055 = vmatmul.mubr.f32.gmra.mrb[10].mxu1 %v313_v53  ;;  %v298_v58 = vmul.f32 0.01, %v252_v56  ;;  %vm282_vm14 = vcmp.ge.f32.partialorder %v252_v56, 0.0  ;;  %v1006_v59 = vpop.f32.mrb[14].mxu0 }
 0x111   :  { %v267_v60 = vadd.f32 %v1006_v59, %v1511_v4  ;;  %v315_v61 = vsel %vm283_vm13, %v257_v52, %v299_v57  ;;  %v261_v62 = vpop.f32.mrb[15].mxu0 }
 0x112   :  { %v314_v63 = vsel %vm282_vm14, %v252_v56, %v298_v58  ;;  %v262_v0 = vadd.f32 %v1511_v4, %v261_v62 }
 0x113   :  { %1057 = vmatprep.mubr.f32.mxu1 %v314_v63  ;;  %v301_v1 = vmul.f32 0.01, %v267_v60  ;;  %vm285_vm15 = vcmp.ge.f32.partialorder %v267_v60, 0.0 }
 0x114   :  { %1058 = vmatmul.mubr.f32.gmra.mrb[12].mxu1 %v315_v61  ;;  %v300_v2 = vmul.f32 0.01, %v262_v0  ;;  %vm284_vm0 = vcmp.ge.f32.partialorder %v262_v0, 0.0 }
 0x115   :  { %v317_v3 = vsel %vm285_vm15, %v267_v60, %v301_v1 }
 0x116   :  { %v316_v5 = vsel %vm284_vm0, %v262_v0, %v300_v2 }
 0x117   :  { %1060 = vmatprep.mubr.f32.mxu1 %v316_v5 }
 0x118   :  { %1061 = vmatmul.mubr.f32.gmra.mrb[14].mxu1 %v317_v3 }
 0x1cf   :  { %v1041_v4 = vpop.f32.mrb[0].mxu1 }
 0x1d0   :  { %v413_v10 = vadd.f32 %v1041_v4, %v1532_v9  ;;  %v407_v11 = vpop.f32.mrb[1].mxu1 }
 0x1d1   :  { %v408_v12 = vadd.f32 %v1532_v9, %v407_v11  ;;  %v1316_v11 = vmov 0.0  }
 0x1d2   :  { %v503_v13 = vmul.f32 0.01, %v413_v10  ;;  %vm487_vm1 = vcmp.ge.f32.partialorder %v413_v10, 0.0 }
 0x1d3   :  { %v502_v14 = vmul.f32 0.01, %v408_v12  ;;  %v1044_v15 = vpop.f32.mrb[2].mxu1  ;;  %vm486_vm2 = vcmp.ge.f32.partialorder %v408_v12, 0.0 }
 0x1d4   :  { %v423_v16 = vadd.f32 %v1044_v15, %v1532_v9  ;;  %v417_v17 = vpop.f32.mrb[3].mxu1  ;;  %v519_v20 = vsel %vm487_vm1, %v413_v10, %v503_v13  ;;  %v1314_v10 = vmov 0.0|0.0   ;;  %vm1315_vm1 = vmmov 0  }
 0x1d5   :  { %v418_v18 = vadd.f32 %v1532_v9, %v417_v17  ;;  %v518_v19 = vsel %vm486_vm2, %v408_v12, %v502_v14  ;;  %1226 = vmatprep.subr.bf16.mxu1 %v1314_v10  ;;  %1151 = vmatprep.mubr.msk.f32.mxu1 %vm1315_vm1, %v1316_v11  ;;  %v821_v12 = vld [vmem:[#allocation2] sm:$0x1]  ;;  %v1317_v13 = vmov 0  }
 0x1d6   :  { %v505_v21 = vmul.f32 0.01, %v423_v16  ;;  %1095 = vmatprep.mubr.f32.mxu0 %v518_v19  ;;  %vm489_vm4 = vcmp.ge.f32.partialorder %v423_v16, 0.0  ;;  %1258 = vset.pattern.permute.xlu0 %v1317_v13 }
 0x1d7   :  { %v504_v22 = vmul.f32 0.01, %v418_v18  ;;  %v1047_v23 = vpop.f32.mrb[4].mxu1  ;;  %1096 = vmatmul.mubr.f32.vlgmr.msra.gmra.mrb[16].mxu0 %v519_v20  ;;  %vm488_vm3 = vcmp.ge.f32.partialorder %v418_v18, 0.0  ;;  %824 = vperm.xlu0 %1258, %v821_v12  }
 0x1d8   :  { %v433_v24 = vadd.f32 %v1047_v23, %v1532_v9  ;;  %v427_v25 = vpop.f32.mrb[5].mxu1  ;;  %v521_v29 = vsel %vm489_vm4, %v423_v16, %v505_v21 }
 0x1d9   :  { %v428_v26 = vadd.f32 %v1532_v9, %v427_v25  ;;  %v520_v27 = vsel %vm488_vm3, %v418_v18, %v504_v22 }
 0x1da   :  { %v507_v28 = vmul.f32 0.01, %v433_v24  ;;  %1098 = vmatprep.mubr.f32.mxu0 %v520_v27  ;;  %vm491_vm5 = vcmp.ge.f32.partialorder %v433_v24, 0.0 }
 0x1db   :  { %v506_v30 = vmul.f32 0.01, %v428_v26  ;;  %1099 = vmatmul.mubr.f32.gmra.mrb[18].mxu0 %v521_v29  ;;  %v1050_v31 = vpop.f32.mrb[6].mxu1  ;;  %vm490_vm6 = vcmp.ge.f32.partialorder %v428_v26, 0.0 }
 0x1dc   :  { %v443_v32 = vadd.f32 %v1050_v31, %v1532_v9  ;;  %v437_v33 = vpop.f32.mrb[7].mxu1  ;;  %v523_v34 = vsel %vm491_vm5, %v433_v24, %v507_v28 }
 0x1dd   :  { %v438_v35 = vadd.f32 %v1532_v9, %v437_v33  ;;  %v522_v36 = vsel %vm490_vm6, %v428_v26, %v506_v30 }
 0x1de   :  { %v509_v37 = vmul.f32 0.01, %v443_v32  ;;  %1101 = vmatprep.mubr.f32.mxu0 %v522_v36  ;;  %vm493_vm7 = vcmp.ge.f32.partialorder %v443_v32, 0.0 }
 0x1df   :  { %v508_v38 = vmul.f32 0.01, %v438_v35  ;;  %1102 = vmatmul.mubr.f32.gmra.mrb[20].mxu0 %v523_v34  ;;  %vm492_vm8 = vcmp.ge.f32.partialorder %v438_v35, 0.0  ;;  %v1053_v39 = vpop.f32.mrb[8].mxu1 }
 0x1e0   :  { %v453_v40 = vadd.f32 %v1053_v39, %v1532_v9  ;;  %v525_v41 = vsel %vm493_vm7, %v443_v32, %v509_v37  ;;  %v447_v42 = vpop.f32.mrb[9].mxu1 }
 0x1e1   :  { %v524_v43 = vsel %vm492_vm8, %v438_v35, %v508_v38  ;;  %v448_v44 = vadd.f32 %v1532_v9, %v447_v42 }
 0x1e2   :  { %1104 = vmatprep.mubr.f32.mxu0 %v524_v43  ;;  %v511_v45 = vmul.f32 0.01, %v453_v40  ;;  %vm495_vm9 = vcmp.ge.f32.partialorder %v453_v40, 0.0 }
 0x1e3   :  { %1105 = vmatmul.mubr.f32.gmra.mrb[22].mxu0 %v525_v41  ;;  %v510_v46 = vmul.f32 0.01, %v448_v44  ;;  %vm494_vm10 = vcmp.ge.f32.partialorder %v448_v44, 0.0  ;;  %v1056_v47 = vpop.f32.mrb[10].mxu1 }
 0x1e4   :  { %v463_v48 = vadd.f32 %v1056_v47, %v1532_v9  ;;  %v527_v49 = vsel %vm495_vm9, %v453_v40, %v511_v45  ;;  %v457_v50 = vpop.f32.mrb[11].mxu1 }
 0x1e5   :  { %v526_v51 = vsel %vm494_vm10, %v448_v44, %v510_v46  ;;  %v458_v52 = vadd.f32 %v1532_v9, %v457_v50 }
 0x1e6   :  { %1107 = vmatprep.mubr.f32.mxu0 %v526_v51  ;;  %v513_v53 = vmul.f32 0.01, %v463_v48  ;;  %vm497_vm11 = vcmp.ge.f32.partialorder %v463_v48, 0.0 }
 0x1e7   :  { %1108 = vmatmul.mubr.f32.gmra.mrb[24].mxu0 %v527_v49  ;;  %v512_v54 = vmul.f32 0.01, %v458_v52  ;;  %vm496_vm12 = vcmp.ge.f32.partialorder %v458_v52, 0.0  ;;  %v1059_v55 = vpop.f32.mrb[12].mxu1 }
 0x1e8   :  { %v473_v56 = vadd.f32 %v1059_v55, %v1532_v9  ;;  %v529_v57 = vsel %vm497_vm11, %v463_v48, %v513_v53  ;;  %v467_v58 = vpop.f32.mrb[13].mxu1 }
 0x1e9   :  { %v528_v59 = vsel %vm496_vm12, %v458_v52, %v512_v54  ;;  %v468_v60 = vadd.f32 %v1532_v9, %v467_v58 }
 0x1ea   :  { %1110 = vmatprep.mubr.f32.mxu0 %v528_v59  ;;  %v515_v61 = vmul.f32 0.01, %v473_v56  ;;  %vm499_vm13 = vcmp.ge.f32.partialorder %v473_v56, 0.0 }
 0x1eb   :  { %1111 = vmatmul.mubr.f32.gmra.mrb[26].mxu0 %v529_v57  ;;  %v514_v62 = vmul.f32 0.01, %v468_v60  ;;  %vm498_vm14 = vcmp.ge.f32.partialorder %v468_v60, 0.0  ;;  %v1062_v63 = vpop.f32.mrb[14].mxu1 }
 0x1ec   :  { %v483_v0 = vadd.f32 %v1062_v63, %v1532_v9  ;;  %v531_v1 = vsel %vm499_vm13, %v473_v56, %v515_v61  ;;  %v477_v2 = vpop.f32.mrb[15].mxu1 }
 0x1ed   :  { %v530_v3 = vsel %vm498_vm14, %v468_v60, %v514_v62  ;;  %v478_v5 = vadd.f32 %v1532_v9, %v477_v2  ;;  %v1554_v9 = vld [vmem:[%s1600_s6] ss:$0 sm:$0xff] }
 0x1ee   :  { %1113 = vmatprep.mubr.f32.mxu0 %v530_v3  ;;  %v517_v6 = vmul.f32 0.01, %v483_v0  ;;  %vm501_vm15 = vcmp.ge.f32.partialorder %v483_v0, 0.0 }
 0x1ef   :  { %1114 = vmatmul.mubr.f32.gmra.mrb[28].mxu0 %v531_v1  ;;  %v516_v7 = vmul.f32 0.01, %v478_v5  ;;  %vm500_vm0 = vcmp.ge.f32.partialorder %v478_v5, 0.0 }
 0x1f0   :  { %v533_v8 = vsel %vm501_vm15, %v483_v0, %v517_v6 }
 0x1f1   :  { %v532_v4 = vsel %vm500_vm0, %v478_v5, %v516_v7 }
 0x1f2   :  { %1116 = vmatprep.mubr.f32.mxu0 %v532_v4 }
 0x1f3   :  { %1117 = vmatmul.mubr.f32.gmra.mrb[30].mxu0 %v533_v8 }
 0x2aa   :  { %v1097_v14 = vpop.f32.mrb[16].mxu0 }
 0x2ab   :  { %v629_v15 = vadd.f32 %v1097_v14, %v1554_v9  ;;  %v623_v16 = vpop.f32.mrb[17].mxu0 }
 0x2ac   :  { %v624_v17 = vadd.f32 %v1554_v9, %v623_v16 }
 0x2ad   :  { %vm703_vm2 = vcmp.ge.f32.partialorder %v629_v15, 0.0  ;;  %v719_v18 = vmul.f32 0.01, %v629_v15 }
 0x2ae   :  { %vm702_vm3 = vcmp.ge.f32.partialorder %v624_v17, 0.0  ;;  %v718_v19 = vmul.f32 0.01, %v624_v17  ;;  %v1100_v20 = vpop.f32.mrb[18].mxu0 }
 0x2af   :  { %v735_v21 = vsel %vm703_vm2, %v629_v15, %v719_v18  ;;  %v639_v22 = vadd.f32 %v1100_v20, %v1554_v9  ;;  %v633_v23 = vpop.f32.mrb[19].mxu0 }
 0x2b0   :  { %v734_v24 = vsel %vm702_vm3, %v624_v17, %v718_v19  ;;  %v634_v25 = vadd.f32 %v1554_v9, %v633_v23 }
 0x2b1   :  { %v1227_v26 = vpack.c.bf16 %v735_v21, %v734_v24  ;;  %vm705_vm4 = vcmp.ge.f32.partialorder %v639_v22, 0.0  ;;  %v721_v27 = vmul.f32 0.01, %v639_v22  ;;  %v827_v24 = vlaneseq }
 0x2b2   :  { %vm704_vm5 = vcmp.ge.f32.partialorder %v634_v25, 0.0  ;;  %v720_v28 = vmul.f32 0.01, %v634_v25  ;;  %v1103_v29 = vpop.f32.mrb[20].mxu0 }
 0x2b3   :  { %v737_v30 = vsel %vm705_vm4, %v639_v22, %v721_v27  ;;  %v649_v31 = vadd.f32 %v1103_v29, %v1554_v9  ;;  %v643_v32 = vpop.f32.mrb[21].mxu0  ;;  %1228 = vmatpush3.bf16.xpose.msra.mxu1 %v1227_v26  ;;  %v825_v27 = vpop.permute.xlu0 %824 }
 0x2b4   :  { %v736_v33 = vsel %vm704_vm5, %v634_v25, %v720_v28  ;;  %v644_v34 = vadd.f32 %v1554_v9, %v643_v32  ;;  %1229 = vmatprep.subr.bf16.mxu1 %v1314_v10  ;;  %v828_v25 = vshrl.u32 %v827_v24, 7 }
 0x2b5   :  { %v1230_v35 = vpack.c.bf16 %v737_v30, %v736_v33  ;;  %vm707_vm6 = vcmp.ge.f32.partialorder %v649_v31, 0.0  ;;  %v723_v36 = vmul.f32 0.01, %v649_v31 }
 0x2b6   :  { %vm706_vm7 = vcmp.ge.f32.partialorder %v644_v34, 0.0  ;;  %v722_v37 = vmul.f32 0.01, %v644_v34  ;;  %v1106_v38 = vpop.f32.mrb[22].mxu0  ;;  %v829_v26 = vsub.s32 0, %v828_v25 }
 0x2b7   :  { %v739_v39 = vsel %vm707_vm6, %v649_v31, %v723_v36  ;;  %v659_v40 = vadd.f32 %v1106_v38, %v1554_v9  ;;  %v653_v41 = vpop.f32.mrb[23].mxu0 }
 0x2b8   :  { %v738_v42 = vsel %vm706_vm7, %v644_v34, %v722_v37  ;;  %v654_v43 = vadd.f32 %v1554_v9, %v653_v41  ;;  %v830_v28 = vrot.slane %v825_v27, %v829_v26 }
 0x2b9   :  { %v1233_v44 = vpack.c.bf16 %v739_v39, %v738_v42  ;;  %vm709_vm8 = vcmp.ge.f32.partialorder %v659_v40, 0.0  ;;  %v725_v45 = vmul.f32 0.01, %v659_v40 }
 0x2ba   :  { %vm708_vm9 = vcmp.ge.f32.partialorder %v654_v43, 0.0  ;;  %v724_v46 = vmul.f32 0.01, %v654_v43  ;;  %v1109_v47 = vpop.f32.mrb[24].mxu0 }
 0x2bb   :  { %v741_v48 = vsel %vm709_vm8, %v659_v40, %v725_v45  ;;  %1231 = vmatpush3.bf16.xpose.msra.mxu1 %v1230_v35  ;;  %v669_v49 = vadd.f32 %v1109_v47, %v1554_v9  ;;  %v663_v50 = vpop.f32.mrb[25].mxu0 }
 0x2bc   :  { %v740_v51 = vsel %vm708_vm9, %v654_v43, %v724_v46  ;;  %v664_v52 = vadd.f32 %v1554_v9, %v663_v50  ;;  %1232 = vmatprep.subr.bf16.mxu1 %v1314_v10 }
 0x2bd   :  { %v1236_v53 = vpack.c.bf16 %v741_v48, %v740_v51  ;;  %vm711_vm10 = vcmp.ge.f32.partialorder %v669_v49, 0.0  ;;  %v727_v54 = vmul.f32 0.01, %v669_v49 }
 0x2be   :  { %vm710_vm11 = vcmp.ge.f32.partialorder %v664_v52, 0.0  ;;  %v726_v55 = vmul.f32 0.01, %v664_v52  ;;  %v1112_v56 = vpop.f32.mrb[26].mxu0 }
 0x2bf   :  { %v743_v57 = vsel %vm711_vm10, %v669_v49, %v727_v54  ;;  %v679_v58 = vadd.f32 %v1112_v56, %v1554_v9  ;;  %v673_v59 = vpop.f32.mrb[27].mxu0 }
 0x2c0   :  { %v742_v60 = vsel %vm710_vm11, %v664_v52, %v726_v55  ;;  %v674_v61 = vadd.f32 %v1554_v9, %v673_v59 }
 0x2c1   :  { %v1239_v62 = vpack.c.bf16 %v743_v57, %v742_v60  ;;  %vm713_vm12 = vcmp.ge.f32.partialorder %v679_v58, 0.0  ;;  %v729_v63 = vmul.f32 0.01, %v679_v58 }
 0x2c2   :  { %vm712_vm13 = vcmp.ge.f32.partialorder %v674_v61, 0.0  ;;  %v728_v0 = vmul.f32 0.01, %v674_v61  ;;  %v1115_v1 = vpop.f32.mrb[28].mxu0 }
 0x2c3   :  { %1234 = vmatpush3.bf16.xpose.msra.mxu1 %v1233_v44  ;;  %v745_v2 = vsel %vm713_vm12, %v679_v58, %v729_v63  ;;  %v689_v3 = vadd.f32 %v1115_v1, %v1554_v9  ;;  %v683_v5 = vpop.f32.mrb[29].mxu0 }
 0x2c4   :  { %v744_v6 = vsel %vm712_vm13, %v674_v61, %v728_v0  ;;  %1235 = vmatprep.subr.bf16.mxu1 %v1314_v10  ;;  %v684_v7 = vadd.f32 %v1554_v9, %v683_v5 }
 0x2c5   :  { %v1242_v8 = vpack.c.bf16 %v745_v2, %v744_v6  ;;  %vm715_vm14 = vcmp.ge.f32.partialorder %v689_v3, 0.0  ;;  %v731_v4 = vmul.f32 0.01, %v689_v3 }
 0x2c6   :  { %vm714_vm15 = vcmp.ge.f32.partialorder %v684_v7, 0.0  ;;  %v730_v11 = vmul.f32 0.01, %v684_v7  ;;  %v1118_v12 = vpop.f32.mrb[30].mxu0 }
 0x2c7   :  { %v747_v13 = vsel %vm715_vm14, %v689_v3, %v731_v4  ;;  %v699_v14 = vadd.f32 %v1118_v12, %v1554_v9  ;;  %v693_v15 = vpop.f32.mrb[31].mxu0 }
 0x2c8   :  { %v746_v16 = vsel %vm714_vm15, %v684_v7, %v730_v11  ;;  %v694_v17 = vadd.f32 %v1554_v9, %v693_v15  ;;  %v750_v9 = vld [vmem:[%s1601_s7] sm:$0xff]  ;;  %s1285_s7 = scalar_lea.vmem %s846_s28, 16 }
 0x2c9   :  { %v1245_v18 = vpack.c.bf16 %v747_v13, %v746_v16  ;;  %vm717_vm0 = vcmp.ge.f32.partialorder %v699_v14, 0.0  ;;  %v733_v19 = vmul.f32 0.01, %v699_v14  ;;  %p1286_p8 = scmp.ne.s32.totalorder %s846_s28, %s1285_s7  ;;  %p1291_p10 = scmp.lt.s32.totalorder %s1289_s29, %s1285_s7 }
 0x2ca   :  { %vm716_vm1 = vcmp.ge.f32.partialorder %v694_v17, 0.0  ;;  %v732_v20 = vmul.f32 0.01, %v694_v17 }
 0x2cb   :  { %1237 = vmatpush3.bf16.xpose.msra.mxu1 %v1236_v53  ;;  %v749_v21 = vsel %vm717_vm0, %v699_v14, %v733_v19  ;;  %p1292_p11 = por %p1291_p10, %p1290_p9 }
 0x2cc   :  { %1238 = vmatprep.subr.bf16.mxu1 %v1314_v10  ;;  %v748_v22 = vsel %vm716_vm1, %v694_v17, %v732_v20 }
 0x2cd   :  { %v1248_v23 = vpack.c.bf16 %v749_v21, %v748_v22  ;;  %p1293_p12 = pnand %p1292_p11, %p1286_p8 }
 0x2d3   :  { %1240 = vmatpush3.bf16.xpose.msra.mxu1 %v1239_v62 }
 0x2d4   :  { %1241 = vmatprep.subr.bf16.mxu1 %v1314_v10 }
 0x2db   :  { %1243 = vmatpush3.bf16.xpose.msra.mxu1 %v1242_v8 }
 0x2dc   :  { %1244 = vmatprep.subr.bf16.mxu1 %v1314_v10 }
 0x2e3   :  { %1246 = vmatpush3.bf16.xpose.msra.mxu1 %v1245_v18 }
 0x2e4   :  { %1247 = vmatprep.subr.bf16.mxu1 %v1314_v10 }
 0x2eb   :  { %1249 = vmatpush3.bf16.xpose.msra.mxu1 %v1248_v23 }
 0x2f2   :  { %1152 = vmatmul.mubr.f32.vlgmr.msra.gmra.mrb[16].mxu1 %v750_v9 }
 0x3c5   :  { %v817_v29 = vpop.f32.mrb[16].mxu1 }
 0x3c6   :  { %v831_v30 = vadd.f32 %v830_v28, %v817_v29  ;;  %v1153_v31 = vpop.f32.mrb[17].mxu1 }
 0x3c8   :  { %v873_v32 = vmul.f32 -1.442695, %v831_v30 }
 0x3ca   :  { %1259 = vpow2.f32 %v873_v32 }
 0x3d4   :  { %v1260_v33 = vpop.eup %1259 }
 0x3d5   :  { %v835_v34 = vadd.f32 1.0, %v1260_v33 }
 0x3d7   :  { %1261 = vrcp.f32 %v835_v34 }
 0x3e1   :  { %v1262_v10 = vpop.eup %1261 }
 0x3e2   :  { %838 = vst [vmem:[#allocation6] sm:$0x1] %v1262_v10 }
 0x3e3   :  { %1296 = shalt.err (!%p1293_p12)
}
 0x3e4   :  { %s1297_s5 = scalar_lea.hbm %s1603_s9, 16 }
 0x3e5   :  { %p1298_p13 = scmp.ne.s32.totalorder %s1603_s9, %s1297_s5  ;;  %p1301_p0 = scmp.lt.u32.totalorder %s1297_s5, %s1603_s9 }
 0x3e7   :  { %p1303_p1 = pnand %p1301_p0, %p1298_p13 }
 0x3e9   :  { %1306 = shalt.err (!%p1303_p1)
}
 0x3ea   :  { %848 = dma.vmem_to_hbm [thread:$0]  %s846_s28, 16, %s1603_s9, [#allocation5]  }
 0x3eb   :  { %1309 = dma.done.wait [#allocation5], 16  }
 0x3ec   :  { %1310 = vsyncadd [#allocation5], 4294967280 }
 0x3ed   :  { %852 = vsyncpa [#allocation4], 1 }
 0x3ee   :  { %853 = vsyncpa [#allocation5], 1 }

</bundles_post_ra>
